<compile_context>
chip_gen: v6e
topology: v6e:2x2x1
jax: 0.10.0
libtpu: 0.0.40
codegen_flags: <defaults>
</compile_context>

<pallas_src>
import math
import numpy as np
import jax
import jax.numpy as jnp
from jax import lax
from jax.experimental import pallas as pl
from jax.experimental.pallas import tpu as pltpu

# ----- small, module-consistent dimensions --------------------------------
B = 2             # batch
C_IN = 4          # input image channels (stand-in for RGB)
H = W = 16        # spatial
NUM_CLASSES = 16  # num_classes (80/81/20 in the real model)
WORD_DIM = 32     # word_feature_dim (300 in the real model)
GC1_OUT = 64      # gc1 out_features (1024 in the real model)
FEAT_DIM = 128    # gc2 out_features == backbone feature dim (1280 real)


# ----- gen_A / gen_adj (glue, plain numpy / JAX) ---------------------------
def gen_A_synth(num_classes, t=0.4, seed=0):
    # Synthetic replacement for the pickled co-occurrence statistics.
    rng = np.random.RandomState(seed)
    _adj = rng.rand(num_classes, num_classes).astype(np.float64) * 10.0
    _nums = rng.rand(num_classes).astype(np.float64) * 20.0 + 1.0
    _nums = _nums[:, np.newaxis]
    _adj = _adj / _nums
    _adj[_adj < t] = 0
    _adj[_adj >= t] = 1
    _adj = _adj * 0.25 / (_adj.sum(0, keepdims=True) + 1e-06)
    _adj = _adj + np.identity(num_classes, np.int32)
    return _adj.astype(np.float32)


def gen_adj(A):
    # guard against zero row sums (not reachable with identity added)
    row_sum = jnp.maximum(A.sum(1), 1e-6)
    D = jnp.diag(jnp.power(row_sum, -0.5))
    return jnp.matmul(jnp.matmul(A, D).T, D)


# ----- Pallas kernel 1: GCN branch (constant w.r.t. the image batch) -------
def gcn_kernel(inp_ref, adj_ref, w1_ref, w2_ref, g2_ref):
    # gc1: support = inp @ W1 ; out = adj @ support
    sup1 = jnp.dot(inp_ref[...], w1_ref[...], preferred_element_type=jnp.float32)
    g1 = jnp.dot(adj_ref[...], sup1, preferred_element_type=jnp.float32)
    # LeakyReLU(0.2)
    g1 = jnp.where(g1 > 0, g1, 0.2 * g1)
    # gc2
    sup2 = jnp.dot(g1, w2_ref[...], preferred_element_type=jnp.float32)
    g2_ref[...] = jnp.dot(adj_ref[...], sup2, preferred_element_type=jnp.float32)


def precompute_gcn_g2(word_features, adj, w1, w2):
    """Run once (cacheable): g2 = adj @ lrelu(adj @ (inp @ W1)) @ W2."""
    vmem = pl.BlockSpec(memory_space=pltpu.MemorySpace.VMEM)
    return pl.pallas_call(
        gcn_kernel,
        out_shape=jax.ShapeDtypeStruct((NUM_CLASSES, FEAT_DIM), jnp.float32),
        in_specs=[vmem] * 4,
        out_specs=vmem,
    )(word_features, adj, w1, w2)


# ----- Pallas kernel 2: whole-batch hot path -------------------------------
def batch_kernel(x_ref, w_ref, g2_ref, out_ref):
    # x_ref : (B, C_IN, HW)          -- whole batch, channel-major, HW lane-dense
    # w_ref : (C_IN, FEAT_DIM)       -- backbone 1x1 conv weight, F lane-dense
    # g2_ref: (NUM_CLASSES, FEAT_DIM)-- precomputed GCN classifier weights
    # out_ref: (B, NUM_CLASSES)
    w = w_ref[...]                                           # (C, F)

    # Static Python loop over the (tiny, static) batch: each image gets one
    # full-width HW=256 MXU pass; the spatial max reduces the sublane axis
    # and leaves a (1, F) lane-dense row directly.
    feats = []
    for bi in range(x_ref.shape[0]):
        xb = x_ref[bi]                                       # (C, HW)
        fmap = lax.dot_general(
            xb, w,
            dimension_numbers=(((0,), (0,)), ((), ())),
            preferred_element_type=jnp.float32)              # (HW, F)
        # AdaptiveMaxPool2d((1,1)) + view -> global max over spatial positions
        feats.append(jnp.max(fmap, axis=0, keepdims=True))   # (1, F)

    feat_b = jnp.concatenate(feats, axis=0)                  # (B, F)

    # Batched classifier: feature @ g2.T without materializing a transpose;
    # one matmul + one (B, NUM_CLASSES) store for the whole batch.
    out_ref[...] = lax.dot_general(
        feat_b, g2_ref[...],
        dimension_numbers=(((1,), (1,)), ((), ())),
        preferred_element_type=jnp.float32)                  # (B, NUM_CLASSES)


def mlgcn_forward(x_nchw, w_feat, g2):
    b, c, h, w = x_nchw.shape
    hw = h * w
    # metadata-only reshape: NCHW -> (B, C, H*W); no host-side transpose
    x_cmajor = x_nchw.reshape(b, c, hw)

    vmem = pl.BlockSpec(memory_space=pltpu.MemorySpace.VMEM)
    return pl.pallas_call(
        batch_kernel,
        out_shape=jax.ShapeDtypeStruct((b, NUM_CLASSES), jnp.float32),
        in_specs=[vmem, vmem, vmem],
        out_specs=vmem,
    )(x_cmajor, w_feat, g2)


# ----- pure-JAX reference (original module semantics) ----------------------
def mlgcn_reference(x_nchw, w_feat, word_features, adj, w1, w2):
    b, c, h, w = x_nchw.shape
    x_flat = jnp.transpose(x_nchw, (0, 2, 3, 1)).reshape(b, h * w, c)
    fmap = jnp.einsum('bpc,cf->bpf', x_flat, w_feat)
    feat = jnp.max(fmap, axis=1)
    g1 = adj @ (word_features @ w1)
    g1 = jnp.where(g1 > 0, g1, 0.2 * g1)
    g2 = adj @ (g1 @ w2)
    return feat @ g2.T


if __name__ == "__main__":
    key = jax.random.PRNGKey(0)
    k_x, k_wf, k_word, k_w1, k_w2 = jax.random.split(key, 5)

    # input image batch, NCHW like the PyTorch module
    x = jax.random.normal(k_x, (B, C_IN, H, W), dtype=jnp.float32)

    # backbone stand-in 1x1 conv weight, stored (C_IN, FEAT_DIM): F lane-dense
    w_feat = 0.1 * jax.random.normal(k_wf, (C_IN, FEAT_DIM), dtype=jnp.float32)

    # word embeddings (the pickled GloVe features in the real model)
    word_features = jax.random.normal(k_word, (NUM_CLASSES, WORD_DIM),
                                      dtype=jnp.float32)

    # GraphConvolution weights, init matching reset_parameters()
    stdv1 = 1.0 / math.sqrt(GC1_OUT)
    w1 = jax.random.uniform(k_w1, (WORD_DIM, GC1_OUT), jnp.float32,
                            minval=-stdv1, maxval=stdv1)
    stdv2 = 1.0 / math.sqrt(FEAT_DIM)
    w2 = jax.random.uniform(k_w2, (GC1_OUT, FEAT_DIM), jnp.float32,
                            minval=-stdv2, maxval=stdv2)

    # adjacency: gen_A (synthetic stats) + gen_adj normalization
    A = jnp.asarray(gen_A_synth(NUM_CLASSES, t=0.4, seed=0))
    adj = gen_adj(A)

    # GCN branch computed once (input-independent) and cached
    g2 = jax.block_until_ready(precompute_gcn_g2(word_features, adj, w1, w2))

    out = mlgcn_forward(x, w_feat, g2)
    out = jax.block_until_ready(out)

    ref = mlgcn_reference(x, w_feat, word_features, adj, w1, w2)
    np.testing.assert_allclose(np.asarray(out), np.asarray(ref),
                               rtol=1e-4, atol=1e-4)
    print("KERNEL_OK")
</pallas_src>

<mosaic_0001>
module attributes {stable_mosaic.version = 11 : i64} {
  func.func @gcn_kernel(%arg0: memref<16x32xf32, #tpu.memory_space<vmem>>, %arg1: memref<16x16xf32, #tpu.memory_space<vmem>>, %arg2: memref<32x64xf32, #tpu.memory_space<vmem>>, %arg3: memref<64x128xf32, #tpu.memory_space<vmem>>, %arg4: memref<16x128xf32, #tpu.memory_space<vmem>>) attributes {dimension_semantics = [], scalar_prefetch = 0 : i64, scratch_operands = 0 : i64, tpu.core_type = #tpu.core_type<tc>} {
    %c0 = arith.constant 0 : index
    %c0_0 = arith.constant 0 : index
    %0 = vector.load %arg0[%c0, %c0_0] : memref<16x32xf32, #tpu.memory_space<vmem>>, vector<16x32xf32>
    %c0_1 = arith.constant 0 : index
    %c0_2 = arith.constant 0 : index
    %1 = vector.load %arg2[%c0_1, %c0_2] : memref<32x64xf32, #tpu.memory_space<vmem>>, vector<32x64xf32>
    %cst = arith.constant dense<0.000000e+00> : vector<16x64xf32>
    %2 = tpu.matmul %0, %1, %cst {dimension_numbers = #tpu.dot_dimension_numbers<[1], [0], [0], [1], [0, 0, 1, 1], [], []>} : vector<16x32xf32>, vector<32x64xf32>, vector<16x64xf32> -> vector<16x64xf32>
    %c0_3 = arith.constant 0 : index
    %c0_4 = arith.constant 0 : index
    %3 = vector.load %arg1[%c0_3, %c0_4] : memref<16x16xf32, #tpu.memory_space<vmem>>, vector<16x16xf32>
    %cst_5 = arith.constant dense<0.000000e+00> : vector<16x64xf32>
    %4 = tpu.matmul %3, %2, %cst_5 {dimension_numbers = #tpu.dot_dimension_numbers<[1], [0], [0], [1], [0, 0, 1, 1], [], []>} : vector<16x16xf32>, vector<16x64xf32>, vector<16x64xf32> -> vector<16x64xf32>
    %cst_6 = arith.constant 0.000000e+00 : f32
    %5 = vector.broadcast %cst_6 : f32 to vector<16x64xf32>
    %6 = arith.cmpf ogt, %4, %5 : vector<16x64xf32>
    %cst_7 = arith.constant 2.000000e-01 : f32
    %7 = vector.broadcast %cst_7 : f32 to vector<16x64xf32>
    %8 = arith.mulf %7, %4 : vector<16x64xf32>
    %9 = arith.select %6, %4, %8 : vector<16x64xi1>, vector<16x64xf32>
    %c0_8 = arith.constant 0 : index
    %c0_9 = arith.constant 0 : index
    %10 = vector.load %arg3[%c0_8, %c0_9] : memref<64x128xf32, #tpu.memory_space<vmem>>, vector<64x128xf32>
    %cst_10 = arith.constant dense<0.000000e+00> : vector<16x128xf32>
    %11 = tpu.matmul %9, %10, %cst_10 {dimension_numbers = #tpu.dot_dimension_numbers<[1], [0], [0], [1], [0, 0, 1, 1], [], []>} : vector<16x64xf32>, vector<64x128xf32>, vector<16x128xf32> -> vector<16x128xf32>
    %c0_11 = arith.constant 0 : index
    %c0_12 = arith.constant 0 : index
    %12 = vector.load %arg1[%c0_11, %c0_12] : memref<16x16xf32, #tpu.memory_space<vmem>>, vector<16x16xf32>
    %cst_13 = arith.constant dense<0.000000e+00> : vector<16x128xf32>
    %13 = tpu.matmul %12, %11, %cst_13 {dimension_numbers = #tpu.dot_dimension_numbers<[1], [0], [0], [1], [0, 0, 1, 1], [], []>} : vector<16x16xf32>, vector<16x128xf32>, vector<16x128xf32> -> vector<16x128xf32>
    %c0_14 = arith.constant 0 : index
    %c0_15 = arith.constant 0 : index
    %14 = vector.load %arg4[%c0_14, %c0_15] : memref<16x128xf32, #tpu.memory_space<vmem>>, vector<16x128xf32>
    tpu.vector_store %arg4[%c0_14, %c0_15], %13 {strides = array<i32>} : memref<16x128xf32, #tpu.memory_space<vmem>>, vector<16x128xf32>,
    return
  }
}

</mosaic_0001>

<bundles_post_ra>
// kernel: tpu_custom_call.1
= control target key start
LH: loop header
LB: loop body
LE: loop exit
PB: predicated region body
PF: predicated region fallthrough
CT: control target
= control target key end

     0   :  { %9 = vsyncpa [#allocation3], 0  ;;  %s696_s0 = inlined_call_operand.hbm [shape: f32[16,32], index: 0, kind: input, shape index: {}]   ;;  %s697_s1 = inlined_call_operand.hbm [shape: f32[16,16], index: 1, kind: input, shape index: {}]   ;;  %s698_s2 = inlined_call_operand.hbm [shape: f32[32,64], index: 2, kind: input, shape index: {}]   ;;  %s699_s3 = inlined_call_operand.hbm [shape: f32[64,128], index: 3, kind: input, shape index: {}]   ;;  %s700_s4 = inlined_call_operand.hbm [shape: f32[16,128], index: 4, kind: output, shape index: {}]  }
   0x1   :  { %10 = vsyncpa [#allocation6], 0 }
   0x2   :  { %11 = vsyncpa [#allocation9], 0 }
   0x3   :  { %12 = vsyncpa [#allocation4], 0  ;;  %s628_s15 = smov [#allocation5]   ;;  %s629_s17 = smov [#allocation2]  }
   0x4   :  { %s30_s16 = sshll.u32 %s628_s15, 4  ;;  %s18_s18 = sshll.u32 %s629_s17, 4  ;;  %s31_s16 = int_to_ptr.vmem [resolvable:$true] %s30_s16  ;;  %s19_s18 = int_to_ptr.vmem [resolvable:$true] %s18_s18 }
   0x5   :  { %s528_s19 = scalar_lea.vmem %s31_s16, 256  ;;  %p533_p1 = scmp.lt.s32.totalorder %s31_s16, %s31_s16 }
   0x6   :  { %p529_p0 = scmp.ne.s32.totalorder %s31_s16, %s528_s19  ;;  %p534_p2 = scmp.lt.s32.totalorder %s528_s19, %s528_s19 }
   0x8   :  { %p535_p3 = por %p534_p2, %p533_p1 }
   0xa   :  { %p536_p4 = pnand %p535_p3, %p529_p0 }
   0xc   :  { %539 = shalt.err (!%p536_p4)
}
   0xd   :  { %s630_s20 = smov 128   ;;  %s631_s21 = smov 8  }
   0xe   :  { %36 = dma.hbm_to_vmem [thread:$0]  %s697_s1, 256, %s31_s16, [#allocation6], %s630_s20, %s630_s20, %s631_s21  }
   0xf   :  { %s548_s24 = scalar_lea.vmem %s19_s18, 256  ;;  %p553_p6 = scmp.lt.s32.totalorder %s19_s18, %s19_s18 }
  0x10   :  { %p549_p5 = scmp.ne.s32.totalorder %s19_s18, %s548_s24  ;;  %p554_p7 = scmp.lt.s32.totalorder %s548_s24, %s548_s24 }
  0x12   :  { %p555_p8 = por %p554_p7, %p553_p6 }
  0x14   :  { %p556_p9 = pnand %p555_p8, %p549_p5 }
  0x16   :  { %559 = shalt.err (!%p556_p9)
}
  0x17   :  { %24 = dma.hbm_to_vmem [thread:$0]  %s696_s0, 256, %s19_s18, [#allocation3], %s630_s20, %s630_s20, %s631_s21  }
  0x18   :  { %s632_s27 = smov [#allocation7]   ;;  %s633_s29 = smov [#allocation8]  }
  0x19   :  { %s42_s28 = sshll.u32 %s632_s27, 4  ;;  %s54_s30 = sshll.u32 %s633_s29, 4  ;;  %s43_s28 = int_to_ptr.vmem [resolvable:$true] %s42_s28  ;;  %s55_s30 = int_to_ptr.vmem [resolvable:$true] %s54_s30 }
  0x1a   :  { %s568_s1 = scalar_lea.vmem %s43_s28, 512  ;;  %p573_p11 = scmp.lt.s32.totalorder %s43_s28, %s43_s28 }
  0x1b   :  { %p569_p10 = scmp.ne.s32.totalorder %s43_s28, %s568_s1  ;;  %p574_p12 = scmp.lt.s32.totalorder %s568_s1, %s568_s1 }
  0x1d   :  { %p575_p13 = por %p574_p12, %p573_p11 }
  0x1f   :  { %p576_p0 = pnand %p575_p13, %p569_p10 }
  0x21   :  { %579 = shalt.err (!%p576_p0)
}
  0x22   :  { %48 = dma.hbm_to_vmem [thread:$0]  %s698_s2, 512, %s43_s28, [#allocation6], %s630_s20, %s630_s20, %s631_s21  }
  0x23   :  { %s588_s0 = scalar_lea.vmem %s55_s30, 1024  ;;  %p593_p2 = scmp.lt.s32.totalorder %s55_s30, %s55_s30 }
  0x24   :  { %p589_p1 = scmp.ne.s32.totalorder %s55_s30, %s588_s0  ;;  %p594_p3 = scmp.lt.s32.totalorder %s588_s0, %s588_s0 }
  0x26   :  { %p595_p4 = por %p594_p3, %p593_p2 }
  0x28   :  { %p596_p5 = pnand %p595_p4, %p589_p1 }
  0x2a   :  { %599 = shalt.err (!%p596_p5)
}
  0x2b   :  { %60 = dma.hbm_to_vmem [thread:$0]  %s699_s3, 1024, %s55_s30, [#allocation9], %s630_s20, %s630_s20, %s631_s21  }
  0x2c   :  { %620 = dma.done.wait [#allocation3], 256  }
  0x2d   :  { %621 = vsyncadd [#allocation3], 4294967040 }
  0x2e   :  { %622 = dma.done.wait [#allocation6], 768  }
  0x2f   :  { %623 = vsyncadd [#allocation6], 4294966528 }
  0x30   :  { %624 = dma.done.wait [#allocation9], 1024  }
  0x31   :  { %625 = vsyncadd [#allocation9], 4294966272  ;;  %vm79_vm0 = vcmask 261120   ;;  %v78_v0 = vld [vmem:[#allocation7 + $0x18] sm:$0xff]  ;;  %v77_v1 = vld [vmem:[#allocation7 + $0x10] sm:$0xff]  ;;  %vm163_vm1 = vcmask 130048  }
  0x32   :  { %469 = vmatprep.subr.mxu0 %v78_v0  ;;  %v73_v2 = vld [vmem:[#allocation2] sm:$0xff]  ;;  %v76_v3 = vld [vmem:[#allocation7 + $0x8] sm:$0xff]  ;;  %v161_v6 = vld [vmem:[#allocation5] sm:$0xff]  ;;  %vm259_vm4 = vcmask 523264   ;;  %s634_s2 = smov [#allocation10]  }
  0x33   :  { %470 = vmatpush3.msra.mxu0 %v78_v0  ;;  %477 = vmatprep.mubr.msk.f32.mxu0 %vm79_vm0, %v73_v2  ;;  %v75_v4 = vld [vmem:[#allocation7] sm:$0xff]  ;;  %v74_v5 = vld [vmem:[#allocation2 + $0x8] sm:$0xff]  ;;  %v258_v7 = vld [vmem:[#allocation8 + $0x38] sm:$0xff]  ;;  %s423_s3 = sshll.u32 %s634_s2, 4  ;;  %s424_s3 = int_to_ptr.vmem [resolvable:$true] %s423_s3 }
  0x34   :  { %471 = vmatprep.subr.mxu0 %v77_v1  ;;  %v257_v8 = vld [vmem:[#allocation8 + $0x30] sm:$0xff]  ;;  %487 = vmatprep.subr.mxu1 %v258_v7  ;;  %v256_v9 = vld [vmem:[#allocation8 + $0x28] sm:$0xff]  ;;  %v255_v10 = vld [vmem:[#allocation8 + $0x20] sm:$0xff]  ;;  %s600_s9 = scalar_lea.vmem %s424_s3, 256  ;;  %p605_p7 = scmp.lt.s32.totalorder %s424_s3, %s424_s3 }
  0x35   :  { %472 = vmatpush3.msra.mxu0 %v77_v1  ;;  %488 = vmatpush3.msra.mxu1 %v258_v7  ;;  %v254_v11 = vld [vmem:[#allocation8 + $0x18] sm:$0xff]  ;;  %v253_v15 = vld [vmem:[#allocation8 + $0x10] sm:$0xff]  ;;  %v252_v16 = vld [vmem:[#allocation8 + $0x8] sm:$0xff]  ;;  %p601_p6 = scmp.ne.s32.totalorder %s424_s3, %s600_s9  ;;  %p606_p8 = scmp.lt.s32.totalorder %s600_s9, %s600_s9 }
  0x36   :  { %473 = vmatprep.subr.mxu0 %v76_v3  ;;  %489 = vmatprep.subr.mxu1 %v257_v8  ;;  %v162_v14 = vld [vmem:[#allocation5 + $0x8] sm:$0xff]  ;;  %v251_v17 = vld [vmem:[#allocation8] sm:$0xff] }
  0x37   :  { %474 = vmatpush3.msra.mxu0 %v76_v3  ;;  %490 = vmatpush3.msra.mxu1 %v257_v8  ;;  %p607_p9 = por %p606_p8, %p605_p7 }
  0x38   :  { %475 = vmatprep.subr.mxu0 %v75_v4  ;;  %491 = vmatprep.subr.mxu1 %v256_v9 }
  0x39   :  { %476 = vmatpush3.msra.mxu0 %v75_v4  ;;  %492 = vmatpush3.msra.mxu1 %v256_v9  ;;  %p608_p10 = pnand %p607_p9, %p601_p6 }
  0x3a   :  { %478 = vmatmul.mubr.msk.f32.vlgmr.msra.gmra.mxu0 %vm79_vm0, %v74_v5  ;;  %493 = vmatprep.subr.mxu1 %v255_v10 }
  0x3b   :  { %484 = vmatprep.mubr.msk.f32.mxu0 %vm163_vm1, %v161_v6  ;;  %494 = vmatpush3.msra.mxu1 %v255_v10 }
  0x3c   :  { %495 = vmatprep.subr.mxu1 %v254_v11 }
  0x3d   :  { %496 = vmatpush3.msra.mxu1 %v254_v11 }
  0x3e   :  { %497 = vmatprep.subr.mxu1 %v253_v15 }
  0x3f   :  { %498 = vmatpush3.msra.mxu1 %v253_v15 }
  0x40   :  { %499 = vmatprep.subr.mxu1 %v252_v16 }
  0x41   :  { %500 = vmatpush3.msra.mxu1 %v252_v16 }
  0x42   :  { %501 = vmatprep.subr.mxu1 %v251_v17 }
  0x43   :  { %502 = vmatpush3.msra.mxu1 %v251_v17 }
  0xfa   :  { %v479_v12 = vpop.f32.mrf.mxu0 }
  0xfb   :  { %480 = vmatprep.subr.mxu0 %v479_v12 }
  0xfc   :  { %v152_v13 = vpop.f32.mrf.mxu0  ;;  %481 = vmatpush3.msra.mxu0 %v479_v12 }
  0xfd   :  { %482 = vmatprep.subr.mxu0 %v152_v13 }
  0xfe   :  { %483 = vmatpush3.msra.mxu0 %v152_v13 }
  0xff   :  { %485 = vmatmul.mubr.msk.f32.vlgmr.msra.gmra.mxu0 %vm163_vm1, %v162_v14 }
 0x100   :  { %510 = vmatprep.mubr.msk.f32.mxu0 %vm163_vm1, %v161_v6 }
 0x1bf   :  { %v486_v18 = vpop.f32.mrf.mxu0 }
 0x1c0   :  { %v248_v19 = vmul.f32 0.2, %v486_v18  ;;  %vm246_vm2 = vcmp.gt.f32.partialorder %v486_v18, 0.0 }
 0x1c1   :  { %v236_v20 = vpop.f32.mrf.mxu0 }
 0x1c2   :  { %v247_v21 = vmul.f32 0.2, %v236_v20  ;;  %vm245_vm3 = vcmp.gt.f32.partialorder %v236_v20, 0.0  ;;  %v250_v23 = vsel %vm246_vm2, %v486_v18, %v248_v19 }
 0x1c4   :  { %v249_v22 = vsel %vm245_vm3, %v236_v20, %v247_v21 }
 0x1c5   :  { %503 = vmatprep.mubr.msk.f32.mxu1 %vm259_vm4, %v249_v22 }
 0x1c6   :  { %504 = vmatmul.mubr.msk.f32.vlgmr.msra.gmra.mxu1 %vm259_vm4, %v250_v23 }
 0x286   :  { %v505_v24 = vpop.f32.mrf.mxu1 }
 0x287   :  { %506 = vmatprep.subr.mxu0 %v505_v24 }
 0x288   :  { %v332_v25 = vpop.f32.mrf.mxu1  ;;  %507 = vmatpush3.msra.mxu0 %v505_v24 }
 0x289   :  { %508 = vmatprep.subr.mxu0 %v332_v25 }
 0x28a   :  { %509 = vmatpush3.msra.mxu0 %v332_v25 }
 0x28b   :  { %511 = vmatmul.mubr.msk.f32.vlgmr.msra.gmra.mxu0 %vm163_vm1, %v162_v14 }
 0x34b   :  { %v512_v26 = vpop.f32.mrf.mxu0 }
 0x34c   :  { %417 = vst [vmem:[#allocation10 + $0x8] sm:$0xff] %v512_v26 }
 0x34d   :  { %v407_v27 = vpop.f32.mrf.mxu0 }
 0x34e   :  { %416 = vst [vmem:[#allocation10] sm:$0xff] %v407_v27 }
 0x34f   :  { %611 = shalt.err (!%p608_p10)
}
 0x350   :  { %429 = dma.vmem_to_hbm [thread:$0]  %s424_s3, 256, %s700_s4, [#allocation4], %s630_s20, %s630_s20, %s631_s21  }
 0x351   :  { %626 = dma.done.wait [#allocation4], 256  }
 0x352   :  { %627 = vsyncadd [#allocation4], 4294967040 }
 0x353   :  { %433 = vsyncpa [#allocation3], 1 }
 0x354   :  { %434 = vsyncpa [#allocation6], 1 }
 0x355   :  { %435 = vsyncpa [#allocation9], 1 }
 0x356   :  { %436 = vsyncpa [#allocation4], 1 }

</bundles_post_ra>
